<compile_context>
chip_gen: v7x
topology: tpu7x:2x2x1
jax: 0.10.0
libtpu: 0.0.40
codegen_flags: <defaults>
</compile_context>

<pallas_src>
import jax
import jax.numpy as jnp
from jax.experimental import pallas as pl
from jax.experimental.pallas import tpu as pltpu


def _round_up(n, m):
    return ((n + m - 1) // m) * m


def bnn_kernel(x_ref, w1_ref, b1_ref, thresh_ref, w2_ref, b2_ref, o_ref, acc_ref):
    k = pl.program_id(1)

    @pl.when(k == 0)
    def _init():
        acc_ref[...] = jnp.zeros_like(acc_ref)

    # fc1 partial over this H tile: (TB, D_in_p) @ (D_in_p, TH) -> f32 on MXU.
    h = jnp.dot(x_ref[...], w1_ref[...], preferred_element_type=jnp.float32)
    # Fused epilogue (f32 on VPU): bias + thresh scale + ReLU.
    h = jnp.maximum(thresh_ref[...] * (h + b1_ref[...]), 0.0)
    # Second layer partial: (TB, TH) @ (TH, D_out_p), accumulate in f32.
    acc_ref[...] += jnp.dot(
        h.astype(w2_ref.dtype), w2_ref[...], preferred_element_type=jnp.float32
    )

    @pl.when(k == pl.num_programs(1) - 1)
    def _store():
        o_ref[...] = (acc_ref[...] + b2_ref[...]).astype(o_ref.dtype)


def prepare_params(w1, b1, thresh, w2, b2, *, param_dtype=jnp.bfloat16):
    """One-time (offline) zero-padding + dtype cast of the parameters.

    Zero rows/cols contribute exactly zero, so semantics are unchanged.
    Weights go to bf16 (halves HBM traffic, enables the fast MXU path);
    biases / thresh stay f32 for the f32 epilogue.
    """
    d_in, h = w1.shape
    d_out = w2.shape[1]
    d_in_p = _round_up(d_in, 128)
    h_p = _round_up(h, 128)
    d_out_p = _round_up(d_out, 128)

    w1_p = jnp.pad(w1, ((0, d_in_p - d_in), (0, h_p - h))).astype(param_dtype)
    b1_p = jnp.pad(b1, ((0, 0), (0, h_p - h))).astype(jnp.float32)
    thresh_p = jnp.pad(thresh, ((0, 0), (0, h_p - h))).astype(jnp.float32)
    w2_p = jnp.pad(w2, ((0, h_p - h), (0, d_out_p - d_out))).astype(param_dtype)
    b2_p = jnp.pad(b2, ((0, 0), (0, d_out_p - d_out))).astype(jnp.float32)
    return w1_p, b1_p, thresh_p, w2_p, b2_p


def _build_specs(TB, D_in_p, TH, D_out_p, single_k, use_single_buffer_params):
    def maybe(mode, shape, imap):
        if mode is None:
            return pl.BlockSpec(shape, imap)
        return pl.BlockSpec(shape, imap, pipeline_mode=mode)

    one = pl.Buffered(1) if use_single_buffer_params else None
    # Weight / bias / thresh tiles are grid-constant only when there is a
    # single H tile; otherwise they revolve along k and want default buffering.
    w_mode = one if single_k else None

    in_specs = [
        pl.BlockSpec((TB, D_in_p), lambda i, k: (i, 0)),    # x: batch-tiled
        maybe(w_mode, (D_in_p, TH), lambda i, k: (0, k)),   # w1
        maybe(w_mode, (1, TH), lambda i, k: (0, k)),        # b1
        maybe(w_mode, (1, TH), lambda i, k: (0, k)),        # thresh
        maybe(w_mode, (TH, D_out_p), lambda i, k: (k, 0)),  # w2
        maybe(one, (1, D_out_p), lambda i, k: (0, 0)),      # b2 (always constant)
    ]
    out_spec = pl.BlockSpec((TB, D_out_p), lambda i, k: (i, 0))
    return in_specs, out_spec


def bnn_forward(x, padded_params, output_size, *, block_b=256, block_h=None):
    w1, b1, thresh, w2, b2 = padded_params
    B, D_in = x.shape
    D_in_p, H_p = w1.shape
    D_out_p = w2.shape[1]

    # ---- batch tiling: TB is always a multiple of 8 ----
    block_b = max(8, _round_up(block_b, 8))
    TB = _round_up(min(block_b, B), 8)
    # Ensure >=2 batch tiles when the batch permits so v7x's two TensorCores
    # (dimension_semantics "parallel") both get work.
    if B > 8:
        TB = min(TB, _round_up(-(-B // 2), 8))
    B_p = _round_up(B, TB)

    # ---- hidden (layer-2 reduction) tiling: TH divides H_p, multiple of 128 ----
    if block_h is None:
        if H_p <= 512:
            TH = H_p
        else:
            TH = 128
            for cand in (512, 384, 256, 128):
                if H_p % cand == 0:
                    TH = cand
                    break
    else:
        TH = min(max(128, _round_up(block_h, 128)), H_p)
        while H_p % TH:
            TH -= 128
    num_k = H_p // TH

    # ---- pad + cast x (zero cols/rows are exact) ----
    x_p = x
    if B_p != B or D_in_p != D_in:
        x_p = jnp.pad(x, ((0, B_p - B), (0, D_in_p - D_in)))
    x_p = x_p.astype(w1.dtype)

    # ---- cost estimate + VMEM budget ----
    bpe_w = jnp.dtype(w1.dtype).itemsize
    flops = 2 * B_p * (D_in_p * H_p + H_p * D_out_p)
    bytes_accessed = (
        B_p * D_in_p * bpe_w
        + D_in_p * H_p * bpe_w + H_p * 4
        + H_p * 4
        + H_p * D_out_p * bpe_w + D_out_p * 4
        + B_p * D_out_p * 4
    )
    cost = pl.CostEstimate(flops=flops, transcendentals=0,
                           bytes_accessed=bytes_accessed)

    w_bufs = 1 if num_k == 1 else 2
    footprint = (
        w_bufs * (D_in_p * TH + TH * D_out_p) * bpe_w   # w1 / w2 tiles
        + w_bufs * 2 * TH * 4                           # b1, thresh tiles
        + D_out_p * 4                                   # b2 (single-buffered)
        + 2 * TB * D_in_p * bpe_w                       # x (double-buffered)
        + 2 * TB * D_out_p * 4                          # out (double-buffered)
        + TB * D_out_p * 4                              # f32 accumulator
    )
    vmem_limit = int(min(128 * 1024 * 1024, max(32 * 1024 * 1024, 2 * footprint)))

    def _call(use_single_buffer_params):
        in_specs, out_spec = _build_specs(
            TB, D_in_p, TH, D_out_p, num_k == 1, use_single_buffer_params
        )
        return pl.pallas_call(
            bnn_kernel,
            out_shape=jax.ShapeDtypeStruct((B_p, D_out_p), jnp.float32),
            grid=(B_p // TB, num_k),
            in_specs=in_specs,
            out_specs=out_spec,
            scratch_shapes=[pltpu.VMEM((TB, D_out_p), jnp.float32)],
            compiler_params=pltpu.CompilerParams(
                dimension_semantics=("parallel", "arbitrary"),
                vmem_limit_bytes=vmem_limit,
            ),
            cost_estimate=cost,
        )(x_p, w1, b1, thresh, w2, b2)

    try:
        out_padded = _call(True)
    except Exception:
        # Fallback for jax versions that reject pipeline_mode=pl.Buffered(1);
        # identical semantics, just default double-buffering of the params.
        out_padded = _call(False)

    # Slice back to the logical (B, output_size) result.
    return out_padded[:B, :output_size]


def init_params(key, input_size, hidden_size, output_size):
    # Deterministic init mimicking PyTorch defaults:
    #  - nn.Linear: U(-1/sqrt(fan_in), 1/sqrt(fan_in)) for weight and bias
    #  - thresh: torch.rand(1, hidden) ~ U(0, 1)
    k1, k2, k3, k4, k5 = jax.random.split(key, 5)
    bound1 = 1.0 / jnp.sqrt(input_size)
    w1 = jax.random.uniform(k1, (input_size, hidden_size), jnp.float32, -bound1, bound1)
    b1 = jax.random.uniform(k2, (1, hidden_size), jnp.float32, -bound1, bound1)
    thresh = jax.random.uniform(k3, (1, hidden_size), jnp.float32, 0.0, 1.0)
    bound2 = 1.0 / jnp.sqrt(hidden_size)
    w2 = jax.random.uniform(k4, (hidden_size, output_size), jnp.float32, -bound2, bound2)
    b2 = jax.random.uniform(k5, (1, output_size), jnp.float32, -bound2, bound2)
    return w1, b1, thresh, w2, b2


if __name__ == "__main__":
    key = jax.random.PRNGKey(0)
    kx, kp = jax.random.split(key)

    batch, input_size, hidden_size, output_size = 8, 64, 32, 10
    x = jax.random.normal(kx, (batch, input_size), jnp.float32)
    w1, b1, thresh, w2, b2 = init_params(kp, input_size, hidden_size, output_size)

    # Pad + cast parameters once (offline) to lane-dense bf16 shapes.
    padded_params = prepare_params(w1, b1, thresh, w2, b2)

    out = bnn_forward(x, padded_params, output_size)
    jax.block_until_ready(out)

    # Pure-JAX f32 reference of the same forward semantics (unpadded params).
    h_ref = jnp.maximum(thresh * (x @ w1 + b1), 0.0)
    ref = h_ref @ w2 + b2
    assert out.shape == (batch, output_size)
    # bf16 matmul operands -> relaxed tolerance vs the f32 reference.
    assert jnp.allclose(out, ref, atol=5e-2, rtol=5e-2), float(
        jnp.max(jnp.abs(out - ref))
    )

    print("KERNEL_OK")
</pallas_src>

<mosaic_0001>
module attributes {stable_mosaic.version = 11 : i64} {
  func.func @bnn_kernel(%arg0: i32, %arg1: i32, %arg2: memref<8x128xbf16, #tpu.memory_space<vmem>>, %arg3: memref<128x128xbf16, #tpu.memory_space<vmem>>, %arg4: memref<1x128xf32, #tpu.memory_space<vmem>>, %arg5: memref<1x128xf32, #tpu.memory_space<vmem>>, %arg6: memref<128x128xbf16, #tpu.memory_space<vmem>>, %arg7: memref<1x128xf32, #tpu.memory_space<vmem>>, %arg8: memref<8x128xf32, #tpu.memory_space<vmem>>, %arg9: memref<8x128xf32, #tpu.memory_space<vmem>>) attributes {dimension_semantics = [#tpu.dimension_semantics<parallel>, #tpu.dimension_semantics<arbitrary>], iteration_bounds = array<i64: 1, 1>, scalar_prefetch = 0 : i64, scratch_operands = 1 : i64, tpu.core_type = #tpu.core_type<tc>, window_params = [{transform_indices = @transform_0, window_bounds = array<i64: 8, 128>}, {pipeline_mode = #tpu.pipeline_mode<synchronous>, transform_indices = @transform_1, window_bounds = array<i64: 128, 128>}, {pipeline_mode = #tpu.pipeline_mode<synchronous>, transform_indices = @transform_2, window_bounds = array<i64: 1, 128>}, {pipeline_mode = #tpu.pipeline_mode<synchronous>, transform_indices = @transform_3, window_bounds = array<i64: 1, 128>}, {pipeline_mode = #tpu.pipeline_mode<synchronous>, transform_indices = @transform_4, window_bounds = array<i64: 128, 128>}, {pipeline_mode = #tpu.pipeline_mode<synchronous>, transform_indices = @transform_5, window_bounds = array<i64: 1, 128>}, {transform_indices = @transform_6, window_bounds = array<i64: 8, 128>}]} {
    %c0_i32 = arith.constant 0 : i32
    %0 = arith.cmpi eq, %arg1, %c0_i32 : i32
    %1 = arith.extui %0 : i1 to i32
    %c0_i32_0 = arith.constant 0 : i32
    %2 = arith.cmpi ne, %1, %c0_i32_0 : i32
    scf.if %2 {
      %cst_18 = arith.constant 0.000000e+00 : f32
      %23 = vector.broadcast %cst_18 : f32 to vector<8x128xf32>
      %c0_19 = arith.constant 0 : index
      %c0_20 = arith.constant 0 : index
      %24 = vector.load %arg9[%c0_19, %c0_20] : memref<8x128xf32, #tpu.memory_space<vmem>>, vector<8x128xf32>
      tpu.vector_store %arg9[%c0_19, %c0_20], %23 {strides = array<i32>} : memref<8x128xf32, #tpu.memory_space<vmem>>, vector<8x128xf32>,
    } else {
    }
    %c0 = arith.constant 0 : index
    %c0_1 = arith.constant 0 : index
    %3 = vector.load %arg2[%c0, %c0_1] : memref<8x128xbf16, #tpu.memory_space<vmem>>, vector<8x128xbf16>
    %c0_2 = arith.constant 0 : index
    %c0_3 = arith.constant 0 : index
    %4 = vector.load %arg3[%c0_2, %c0_3] : memref<128x128xbf16, #tpu.memory_space<vmem>>, vector<128x128xbf16>
    %cst = arith.constant dense<0.000000e+00> : vector<8x128xf32>
    %5 = tpu.matmul %3, %4, %cst {dimension_numbers = #tpu.dot_dimension_numbers<[1], [0], [0], [1], [0, 0, 1, 1], [], []>} : vector<8x128xbf16>, vector<128x128xbf16>, vector<8x128xf32> -> vector<8x128xf32>
    %c0_4 = arith.constant 0 : index
    %c0_5 = arith.constant 0 : index
    %6 = vector.load %arg5[%c0_4, %c0_5] : memref<1x128xf32, #tpu.memory_space<vmem>>, vector<1x128xf32>
    %c0_6 = arith.constant 0 : index
    %c0_7 = arith.constant 0 : index
    %7 = vector.load %arg4[%c0_6, %c0_7] : memref<1x128xf32, #tpu.memory_space<vmem>>, vector<1x128xf32>
    %8 = vector.broadcast %7 : vector<1x128xf32> to vector<8x128xf32>
    %9 = arith.addf %5, %8 : vector<8x128xf32>
    %10 = vector.broadcast %6 : vector<1x128xf32> to vector<8x128xf32>
    %11 = arith.mulf %10, %9 : vector<8x128xf32>
    %cst_8 = arith.constant 0.000000e+00 : f32
    %12 = vector.broadcast %cst_8 : f32 to vector<8x128xf32>
    %13 = arith.maximumf %11, %12 : vector<8x128xf32>
    %c0_9 = arith.constant 0 : index
    %c0_10 = arith.constant 0 : index
    %14 = vector.load %arg9[%c0_9, %c0_10] : memref<8x128xf32, #tpu.memory_space<vmem>>, vector<8x128xf32>
    %15 = arith.truncf %13 : vector<8x128xf32> to vector<8x128xbf16>
    %c0_11 = arith.constant 0 : index
    %c0_12 = arith.constant 0 : index
    %16 = vector.load %arg6[%c0_11, %c0_12] : memref<128x128xbf16, #tpu.memory_space<vmem>>, vector<128x128xbf16>
    %cst_13 = arith.constant dense<0.000000e+00> : vector<8x128xf32>
    %17 = tpu.matmul %15, %16, %cst_13 {dimension_numbers = #tpu.dot_dimension_numbers<[1], [0], [0], [1], [0, 0, 1, 1], [], []>} : vector<8x128xbf16>, vector<128x128xbf16>, vector<8x128xf32> -> vector<8x128xf32>
    %18 = arith.addf %14, %17 : vector<8x128xf32>
    %c0_14 = arith.constant 0 : index
    %c0_15 = arith.constant 0 : index
    %19 = vector.load %arg9[%c0_14, %c0_15] : memref<8x128xf32, #tpu.memory_space<vmem>>, vector<8x128xf32>
    tpu.vector_store %arg9[%c0_14, %c0_15], %18 {strides = array<i32>} : memref<8x128xf32, #tpu.memory_space<vmem>>, vector<8x128xf32>,
    %c0_i32_16 = arith.constant 0 : i32
    %20 = arith.cmpi eq, %arg1, %c0_i32_16 : i32
    %21 = arith.extui %20 : i1 to i32
    %c0_i32_17 = arith.constant 0 : i32
    %22 = arith.cmpi ne, %21, %c0_i32_17 : i32
    scf.if %22 {
      %c0_18 = arith.constant 0 : index
      %c0_19 = arith.constant 0 : index
      %23 = vector.load %arg9[%c0_18, %c0_19] : memref<8x128xf32, #tpu.memory_space<vmem>>, vector<8x128xf32>
      %c0_20 = arith.constant 0 : index
      %c0_21 = arith.constant 0 : index
      %24 = vector.load %arg7[%c0_20, %c0_21] : memref<1x128xf32, #tpu.memory_space<vmem>>, vector<1x128xf32>
      %25 = vector.broadcast %24 : vector<1x128xf32> to vector<8x128xf32>
      %26 = arith.addf %23, %25 : vector<8x128xf32>
      %c0_22 = arith.constant 0 : index
      %c0_23 = arith.constant 0 : index
      %27 = vector.load %arg8[%c0_22, %c0_23] : memref<8x128xf32, #tpu.memory_space<vmem>>, vector<8x128xf32>
      tpu.vector_store %arg8[%c0_22, %c0_23], %26 {strides = array<i32>} : memref<8x128xf32, #tpu.memory_space<vmem>>, vector<8x128xf32>,
    } else {
    }
    return
  }
  func.func @transform_0(%arg0: i32, %arg1: i32) -> (i32, i32) {
    %c0_i32 = arith.constant 0 : i32
    %c0_i32_0 = arith.constant 0 : i32
    return %arg0, %c0_i32 : i32, i32
  }
  func.func @transform_1(%arg0: i32, %arg1: i32) -> (i32, i32) {
    %c0_i32 = arith.constant 0 : i32
    %c0_i32_0 = arith.constant 0 : i32
    return %c0_i32, %arg1 : i32, i32
  }
  func.func @transform_2(%arg0: i32, %arg1: i32) -> (i32, i32) {
    %c0_i32 = arith.constant 0 : i32
    %c0_i32_0 = arith.constant 0 : i32
    return %c0_i32, %arg1 : i32, i32
  }
  func.func @transform_3(%arg0: i32, %arg1: i32) -> (i32, i32) {
    %c0_i32 = arith.constant 0 : i32
    %c0_i32_0 = arith.constant 0 : i32
    return %c0_i32, %arg1 : i32, i32
  }
  func.func @transform_4(%arg0: i32, %arg1: i32) -> (i32, i32) {
    %c0_i32 = arith.constant 0 : i32
    %c0_i32_0 = arith.constant 0 : i32
    return %arg1, %c0_i32 : i32, i32
  }
  func.func @transform_5(%arg0: i32, %arg1: i32) -> (i32, i32) {
    %c0_i32 = arith.constant 0 : i32
    %c0_i32_0 = arith.constant 0 : i32
    %c0_i32_1 = arith.constant 0 : i32
    return %c0_i32, %c0_i32_0 : i32, i32
  }
  func.func @transform_6(%arg0: i32, %arg1: i32) -> (i32, i32) {
    %c0_i32 = arith.constant 0 : i32
    %c0_i32_0 = arith.constant 0 : i32
    return %arg0, %c0_i32 : i32, i32
  }
}

module attributes {stable_mosaic.version = 11 : i64} {
  func.func @bnn_kernel(%arg0: i32, %arg1: i32, %arg2: memref<8x128xbf16, #tpu.memory_space<vmem>>, %arg3: memref<128x128xbf16, #tpu.memory_space<vmem>>, %arg4: memref<1x128xf32, #tpu.memory_space<vmem>>, %arg5: memref<1x128xf32, #tpu.memory_space<vmem>>, %arg6: memref<128x128xbf16, #tpu.memory_space<vmem>>, %arg7: memref<1x128xf32, #tpu.memory_space<vmem>>, %arg8: memref<8x128xf32, #tpu.memory_space<vmem>>, %arg9: memref<8x128xf32, #tpu.memory_space<vmem>>) attributes {dimension_semantics = [#tpu.dimension_semantics<parallel>, #tpu.dimension_semantics<arbitrary>], iteration_bounds = array<i64: 1, 1>, scalar_prefetch = 0 : i64, scratch_operands = 1 : i64, tpu.core_type = #tpu.core_type<tc>, window_params = [{transform_indices = @transform_0, window_bounds = array<i64: 8, 128>}, {transform_indices = @transform_1, window_bounds = array<i64: 128, 128>}, {transform_indices = @transform_2, window_bounds = array<i64: 1, 128>}, {transform_indices = @transform_3, window_bounds = array<i64: 1, 128>}, {transform_indices = @transform_4, window_bounds = array<i64: 128, 128>}, {pipeline_mode = #tpu.pipeline_mode<synchronous>, transform_indices = @transform_5, window_bounds = array<i64: 1, 128>}, {transform_indices = @transform_6, window_bounds = array<i64: 8, 128>}]} {
    %c0_i32 = arith.constant 0 : i32
    %0 = arith.cmpi eq, %arg1, %c0_i32 : i32
    %1 = arith.extui %0 : i1 to i32
    %c0_i32_0 = arith.constant 0 : i32
    %2 = arith.cmpi ne, %1, %c0_i32_0 : i32
    scf.if %2 {
      %cst_18 = arith.constant 0.000000e+00 : f32
      %23 = vector.broadcast %cst_18 : f32 to vector<8x128xf32>
      %c0_19 = arith.constant 0 : index
      %c0_20 = arith.constant 0 : index
      %24 = vector.load %arg9[%c0_19, %c0_20] : memref<8x128xf32, #tpu.memory_space<vmem>>, vector<8x128xf32>
      tpu.vector_store %arg9[%c0_19, %c0_20], %23 {strides = array<i32>} : memref<8x128xf32, #tpu.memory_space<vmem>>, vector<8x128xf32>,
    } else {
    }
    %c0 = arith.constant 0 : index
    %c0_1 = arith.constant 0 : index
    %3 = vector.load %arg2[%c0, %c0_1] : memref<8x128xbf16, #tpu.memory_space<vmem>>, vector<8x128xbf16>
    %c0_2 = arith.constant 0 : index
    %c0_3 = arith.constant 0 : index
    %4 = vector.load %arg3[%c0_2, %c0_3] : memref<128x128xbf16, #tpu.memory_space<vmem>>, vector<128x128xbf16>
    %cst = arith.constant dense<0.000000e+00> : vector<8x128xf32>
    %5 = tpu.matmul %3, %4, %cst {dimension_numbers = #tpu.dot_dimension_numbers<[1], [0], [0], [1], [0, 0, 1, 1], [], []>} : vector<8x128xbf16>, vector<128x128xbf16>, vector<8x128xf32> -> vector<8x128xf32>
    %c0_4 = arith.constant 0 : index
    %c0_5 = arith.constant 0 : index
    %6 = vector.load %arg5[%c0_4, %c0_5] : memref<1x128xf32, #tpu.memory_space<vmem>>, vector<1x128xf32>
    %c0_6 = arith.constant 0 : index
    %c0_7 = arith.constant 0 : index
    %7 = vector.load %arg4[%c0_6, %c0_7] : memref<1x128xf32, #tpu.memory_space<vmem>>, vector<1x128xf32>
    %8 = vector.broadcast %7 : vector<1x128xf32> to vector<8x128xf32>
    %9 = arith.addf %5, %8 : vector<8x128xf32>
    %10 = vector.broadcast %6 : vector<1x128xf32> to vector<8x128xf32>
    %11 = arith.mulf %10, %9 : vector<8x128xf32>
    %cst_8 = arith.constant 0.000000e+00 : f32
    %12 = vector.broadcast %cst_8 : f32 to vector<8x128xf32>
    %13 = arith.maximumf %11, %12 : vector<8x128xf32>
    %c0_9 = arith.constant 0 : index
    %c0_10 = arith.constant 0 : index
    %14 = vector.load %arg9[%c0_9, %c0_10] : memref<8x128xf32, #tpu.memory_space<vmem>>, vector<8x128xf32>
    %15 = arith.truncf %13 : vector<8x128xf32> to vector<8x128xbf16>
    %c0_11 = arith.constant 0 : index
    %c0_12 = arith.constant 0 : index
    %16 = vector.load %arg6[%c0_11, %c0_12] : memref<128x128xbf16, #tpu.memory_space<vmem>>, vector<128x128xbf16>
    %cst_13 = arith.constant dense<0.000000e+00> : vector<8x128xf32>
    %17 = tpu.matmul %15, %16, %cst_13 {dimension_numbers = #tpu.dot_dimension_numbers<[1], [0], [0], [1], [0, 0, 1, 1], [], []>} : vector<8x128xbf16>, vector<128x128xbf16>, vector<8x128xf32> -> vector<8x128xf32>
    %18 = arith.addf %14, %17 : vector<8x128xf32>
    %c0_14 = arith.constant 0 : index
    %c0_15 = arith.constant 0 : index
    %19 = vector.load %arg9[%c0_14, %c0_15] : memref<8x128xf32, #tpu.memory_space<vmem>>, vector<8x128xf32>
    tpu.vector_store %arg9[%c0_14, %c0_15], %18 {strides = array<i32>} : memref<8x128xf32, #tpu.memory_space<vmem>>, vector<8x128xf32>,
    %c0_i32_16 = arith.constant 0 : i32
    %20 = arith.cmpi eq, %arg1, %c0_i32_16 : i32
    %21 = arith.extui %20 : i1 to i32
    %c0_i32_17 = arith.constant 0 : i32
    %22 = arith.cmpi ne, %21, %c0_i32_17 : i32
    scf.if %22 {
      %c0_18 = arith.constant 0 : index
      %c0_19 = arith.constant 0 : index
      %23 = vector.load %arg9[%c0_18, %c0_19] : memref<8x128xf32, #tpu.memory_space<vmem>>, vector<8x128xf32>
      %c0_20 = arith.constant 0 : index
      %c0_21 = arith.constant 0 : index
      %24 = vector.load %arg7[%c0_20, %c0_21] : memref<1x128xf32, #tpu.memory_space<vmem>>, vector<1x128xf32>
      %25 = vector.broadcast %24 : vector<1x128xf32> to vector<8x128xf32>
      %26 = arith.addf %23, %25 : vector<8x128xf32>
      %c0_22 = arith.constant 0 : index
      %c0_23 = arith.constant 0 : index
      %27 = vector.load %arg8[%c0_22, %c0_23] : memref<8x128xf32, #tpu.memory_space<vmem>>, vector<8x128xf32>
      tpu.vector_store %arg8[%c0_22, %c0_23], %26 {strides = array<i32>} : memref<8x128xf32, #tpu.memory_space<vmem>>, vector<8x128xf32>,
    } else {
    }
    return
  }
  func.func @transform_0(%arg0: i32, %arg1: i32) -> (i32, i32) {
    %c0_i32 = arith.constant 0 : i32
    %c0_i32_0 = arith.constant 0 : i32
    return %arg0, %c0_i32 : i32, i32
  }
  func.func @transform_1(%arg0: i32, %arg1: i32) -> (i32, i32) {
    %c0_i32 = arith.constant 0 : i32
    %c0_i32_0 = arith.constant 0 : i32
    return %c0_i32, %arg1 : i32, i32
  }
  func.func @transform_2(%arg0: i32, %arg1: i32) -> (i32, i32) {
    %c0_i32 = arith.constant 0 : i32
    %c0_i32_0 = arith.constant 0 : i32
    return %c0_i32, %arg1 : i32, i32
  }
  func.func @transform_3(%arg0: i32, %arg1: i32) -> (i32, i32) {
    %c0_i32 = arith.constant 0 : i32
    %c0_i32_0 = arith.constant 0 : i32
    return %c0_i32, %arg1 : i32, i32
  }
  func.func @transform_4(%arg0: i32, %arg1: i32) -> (i32, i32) {
    %c0_i32 = arith.constant 0 : i32
    %c0_i32_0 = arith.constant 0 : i32
    return %arg1, %c0_i32 : i32, i32
  }
  func.func @transform_5(%arg0: i32, %arg1: i32) -> (i32, i32) {
    %c0_i32 = arith.constant 0 : i32
    %c0_i32_0 = arith.constant 0 : i32
    %c0_i32_1 = arith.constant 0 : i32
    return %c0_i32, %c0_i32_0 : i32, i32
  }
  func.func @transform_6(%arg0: i32, %arg1: i32) -> (i32, i32) {
    %c0_i32 = arith.constant 0 : i32
    %c0_i32_0 = arith.constant 0 : i32
    return %arg0, %c0_i32 : i32, i32
  }
}

</mosaic_0001>

<bundles_post_ra>
// kernel: tpu_custom_call.1
= control target key start
LH: loop header
LB: loop body
LE: loop exit
PB: predicated region body
PF: predicated region fallthrough
CT: control target
= control target key end

     0   :  { %11 = vsyncpa [#allocation4], 0  ;;  %s628_s0 = inlined_call_operand.hbm [shape: bf16[8,128], index: 0, kind: input, shape index: {}]   ;;  %s629_s1 = inlined_call_operand.hbm [shape: bf16[128,128], index: 1, kind: input, shape index: {}]   ;;  %s630_s2 = inlined_call_operand.vmem [shape: f32[1,128], index: 2, kind: input, shape index: {}]   ;;  %s631_s3 = inlined_call_operand.vmem [shape: f32[1,128], index: 3, kind: input, shape index: {}]   ;;  %s632_s4 = inlined_call_operand.hbm [shape: bf16[128,128], index: 4, kind: input, shape index: {}]   ;;  %s633_s5 = inlined_call_operand.vmem [shape: f32[1,128], index: 5, kind: input, shape index: {}]   ;;  %s634_s6 = inlined_call_operand.hbm [shape: f32[8,128], index: 6, kind: output, shape index: {}]  }
   0x1   :  { %12 = vsyncpa [#allocation7], 0 }
   0x2   :  { %13 = vsyncpa [#allocation5], 0  ;;  %s522_s21 = smov [#allocation6]   ;;  %s428_s25 = scalar_lea.hbm %s629_s1, 1024 }
   0x3   :  { %s29_s22 = sshll.u32 %s522_s21, 4  ;;  %p429_p0 = scmp.ne.s32.totalorder %s629_s1, %s428_s25  ;;  %s30_s22 = int_to_ptr.vmem [resolvable:$true] %s29_s22 }
   0x4   :  { %p432_p1 = scmp.lt.u32.totalorder %s428_s25, %s629_s1 }
   0x6   :  { %p434_p2 = pnand %p432_p1, %p429_p0 }
   0x8   :  { %437 = shalt.err (!%p434_p2)
}
   0x9   :  { %s438_s30 = scalar_lea.vmem %s30_s22, 1024  ;;  %p443_p4 = scmp.lt.s32.totalorder %s30_s22, %s30_s22 }
   0xa   :  { %p439_p3 = scmp.ne.s32.totalorder %s30_s22, %s438_s30  ;;  %p444_p5 = scmp.lt.s32.totalorder %s438_s30, %s438_s30 }
   0xc   :  { %p445_p6 = por %p444_p5, %p443_p4 }
   0xe   :  { %p446_p7 = pnand %p445_p6, %p439_p3 }
  0x10   :  { %449 = shalt.err (!%p446_p7)
}
  0x11   :  { %s523_s7 = smov 64   ;;  %s524_s8 = smov 4  }
  0x12   :  { %35 = dma.hbm_to_vmem [thread:$0]  %s629_s1, 1024, %s30_s22, [#allocation7], %s523_s7, %s523_s7, %s524_s8  }
  0x13   :  { %s525_s11 = smov [#allocation3]   ;;  %s526_s13 = smov [#allocation8]  }
  0x14   :  { %s20_s12 = sshll.u32 %s525_s11, 4  ;;  %s45_s14 = sshll.u32 %s526_s13, 4  ;;  %s21_s12 = int_to_ptr.vmem [resolvable:$true] %s20_s12  ;;  %s46_s14 = int_to_ptr.vmem [resolvable:$true] %s45_s14 }
  0x15   :  { %s450_s17 = scalar_lea.hbm %s628_s0, 64 }
  0x16   :  { %p451_p8 = scmp.ne.s32.totalorder %s628_s0, %s450_s17  ;;  %p454_p9 = scmp.lt.u32.totalorder %s450_s17, %s628_s0 }
  0x18   :  { %p456_p10 = pnand %p454_p9, %p451_p8 }
  0x1a   :  { %459 = shalt.err (!%p456_p10)
}
  0x1b   :  { %s460_s1 = scalar_lea.vmem %s21_s12, 64  ;;  %p465_p12 = scmp.lt.s32.totalorder %s21_s12, %s21_s12 }
  0x1c   :  { %p461_p11 = scmp.ne.s32.totalorder %s21_s12, %s460_s1  ;;  %p466_p13 = scmp.lt.s32.totalorder %s460_s1, %s460_s1 }
  0x1e   :  { %p467_p0 = por %p466_p13, %p465_p12 }
  0x20   :  { %p468_p1 = pnand %p467_p0, %p461_p11 }
  0x22   :  { %471 = shalt.err (!%p468_p1)
}
  0x23   :  { %23 = dma.hbm_to_vmem [thread:$0]  %s628_s0, 64, %s21_s12, [#allocation4]  }
  0x24   :  { %s472_s26 = scalar_lea.hbm %s632_s4, 1024 }
  0x25   :  { %p473_p2 = scmp.ne.s32.totalorder %s632_s4, %s472_s26  ;;  %p476_p3 = scmp.lt.u32.totalorder %s472_s26, %s632_s4 }
  0x27   :  { %p478_p4 = pnand %p476_p3, %p473_p2 }
  0x29   :  { %481 = shalt.err (!%p478_p4)
}
  0x2a   :  { %s482_s9 = scalar_lea.vmem %s46_s14, 1024  ;;  %p487_p6 = scmp.lt.s32.totalorder %s46_s14, %s46_s14 }
  0x2b   :  { %p483_p5 = scmp.ne.s32.totalorder %s46_s14, %s482_s9  ;;  %p488_p7 = scmp.lt.s32.totalorder %s482_s9, %s482_s9 }
  0x2d   :  { %p489_p8 = por %p488_p7, %p487_p6 }
  0x2f   :  { %p490_p9 = pnand %p489_p8, %p483_p5 }
  0x31   :  { %493 = shalt.err (!%p490_p9)
}
  0x32   :  { %51 = dma.hbm_to_vmem [thread:$0]  %s632_s4, 1024, %s46_s14, [#allocation7], %s523_s7, %s523_s7, %s524_s8  }
  0x33   :  { %516 = dma.done.wait [#allocation4], 64  }
  0x34   :  { %517 = vsyncadd [#allocation4], 4294967232 }
  0x35   :  { %518 = dma.done.wait [#allocation7], 2048  }
  0x36   :  { %519 = vsyncadd [#allocation7], 4294965248  ;;  %v527_v0 = vmov 0.0   ;;  %vm528_vm0 = vmmov 0   ;;  %v412_v1 = vld [vmem:[#allocation6] sm:$0xff]   ;;  %v413_v2 = vld [vmem:[#allocation6 + $0x8] sm:$0xff]  }
  0x37   :  { %364 = vmatprep.subr.bf16.mxu0 %v527_v0  ;;  %380 = vmatprep.mubr.msk.bf16.mxu0 %vm528_vm0, %v527_v0  ;;  %v414_v3 = vld [vmem:[#allocation6 + $0x10] sm:$0xff]   ;;  %v420_v4 = vld [vmem:[#allocation8] sm:$0xff]   ;;  %v415_v5 = vld [vmem:[#allocation6 + $0x18] sm:$0xff]   ;;  %s529_s14 = smov [#allocation9]  }
  0x38   :  { %384 = vmatprep.subr.bf16.mxu1 %v527_v0  ;;  %400 = vmatprep.mubr.msk.bf16.mxu1 %vm528_vm0, %v527_v0  ;;  %v421_v6 = vld [vmem:[#allocation8 + $0x8] sm:$0xff]   ;;  %v416_v7 = vld [vmem:[#allocation6 + $0x20] sm:$0xff]   ;;  %v422_v8 = vld [vmem:[#allocation8 + $0x10] sm:$0xff]   ;;  %s317_s15 = sshll.u32 %s529_s14, 4  ;;  %s318_s15 = int_to_ptr.vmem [resolvable:$true] %s317_s15 }
  0x39   :  { %365 = vmatpush3.bf16.msra.mxu0 %v412_v1  ;;  %385 = vmatpush3.bf16.msra.mxu1 %v420_v4  ;;  %v417_v9 = vld [vmem:[#allocation6 + $0x28] sm:$0xff]   ;;  %v423_v10 = vld [vmem:[#allocation8 + $0x18] sm:$0xff]   ;;  %v418_v11 = vld [vmem:[#allocation6 + $0x30] sm:$0xff]   ;;  %p499_p11 = scmp.lt.s32.totalorder %s318_s15, %s318_s15 }
  0x3a   :  { %366 = vmatprep.subr.bf16.mxu0 %v527_v0  ;;  %386 = vmatprep.subr.bf16.mxu1 %v527_v0  ;;  %v424_v12 = vld [vmem:[#allocation8 + $0x20] sm:$0xff]   ;;  %v419_v13 = vld [vmem:[#allocation6 + $0x38] sm:$0xff]   ;;  %v425_v14 = vld [vmem:[#allocation8 + $0x28] sm:$0xff]  }
  0x3b   :  { %v69_v15 = vld [vmem:[#allocation3] sm:$0xf]  ;;  %v426_v16 = vld [vmem:[#allocation8 + $0x30] sm:$0xff]  }
  0x3c   :  { %v427_v17 = vld [vmem:[#allocation8 + $0x38] sm:$0xff]  }
  0x3d   :  { %367 = vmatpush3.bf16.msra.mxu0 %v413_v2  ;;  %387 = vmatpush3.bf16.msra.mxu1 %v421_v6  ;;  %v327_v18 = vld [vmem:[%s630_s2] ss:$0 sm:$0xff]  ;;  %s494_s2 = scalar_lea.vmem %s318_s15, 128 }
  0x3e   :  { %368 = vmatprep.subr.bf16.mxu0 %v527_v0  ;;  %388 = vmatprep.subr.bf16.mxu1 %v527_v0  ;;  %v336_v19 = vld [vmem:[%s631_s3] ss:$0 sm:$0xff]  ;;  %p495_p10 = scmp.ne.s32.totalorder %s318_s15, %s494_s2  ;;  %p500_p12 = scmp.lt.s32.totalorder %s494_s2, %s494_s2 }
  0x3f   :  { %v345_v28 = vld [vmem:[%s633_s5] ss:$0 sm:$0xff] }
  0x40   :  { %p501_p13 = por %p500_p12, %p499_p11 }
  0x41   :  { %369 = vmatpush3.bf16.msra.mxu0 %v414_v3  ;;  %389 = vmatpush3.bf16.msra.mxu1 %v422_v8 }
  0x42   :  { %370 = vmatprep.subr.bf16.mxu0 %v527_v0  ;;  %390 = vmatprep.subr.bf16.mxu1 %v527_v0  ;;  %p502_p0 = pnand %p501_p13, %p495_p10 }
  0x45   :  { %371 = vmatpush3.bf16.msra.mxu0 %v415_v5  ;;  %391 = vmatpush3.bf16.msra.mxu1 %v423_v10 }
  0x46   :  { %372 = vmatprep.subr.bf16.mxu0 %v527_v0  ;;  %392 = vmatprep.subr.bf16.mxu1 %v527_v0 }
  0x49   :  { %373 = vmatpush3.bf16.msra.mxu0 %v416_v7  ;;  %393 = vmatpush3.bf16.msra.mxu1 %v424_v12 }
  0x4a   :  { %374 = vmatprep.subr.bf16.mxu0 %v527_v0  ;;  %394 = vmatprep.subr.bf16.mxu1 %v527_v0 }
  0x4d   :  { %375 = vmatpush3.bf16.msra.mxu0 %v417_v9  ;;  %395 = vmatpush3.bf16.msra.mxu1 %v425_v14 }
  0x4e   :  { %376 = vmatprep.subr.bf16.mxu0 %v527_v0  ;;  %396 = vmatprep.subr.bf16.mxu1 %v527_v0 }
  0x51   :  { %377 = vmatpush3.bf16.msra.mxu0 %v418_v11  ;;  %397 = vmatpush3.bf16.msra.mxu1 %v426_v16 }
  0x52   :  { %378 = vmatprep.subr.bf16.mxu0 %v527_v0  ;;  %398 = vmatprep.subr.bf16.mxu1 %v527_v0 }
  0x55   :  { %379 = vmatpush3.bf16.msra.mxu0 %v419_v13  ;;  %399 = vmatpush3.bf16.msra.mxu1 %v427_v17 }
  0x58   :  { %381 = vmatmul.mubr.bf16.vlgmr.msra.gmra.mrb[0].mxu0 %v69_v15 }
 0x12b   :  { %v176_v20 = vpop.f32.mrb[0].mxu0 }
 0x12c   :  { %v177_v21 = vadd.f32 %v327_v18, %v176_v20  ;;  %v382_v22 = vpop.f32.mrb[1].mxu0 }
 0x12d   :  { %v179_v23 = vpop.f32.mrb[2].mxu0 }
 0x12e   :  { %v188_v24 = vmul.f32 %v336_v19, %v177_v21  ;;  %v383_v25 = vpop.f32.mrb[3].mxu0 }
 0x130   :  { %v189_v26 = vmax.f32 %v188_v24, 0.0 }
 0x132   :  { %v191_v27 = vpack.c.bf16 %v189_v26, %v189_v26 }
 0x134   :  { %401 = vmatmul.mubr.bf16.vlgmr.msra.gmra.mrb[0].mxu1 %v191_v27 }
 0x207   :  { %v290_v29 = vpop.f32.mrb[0].mxu1 }
 0x208   :  { %v309_v30 = vadd.f32 %v345_v28, %v290_v29  ;;  %v402_v31 = vpop.f32.mrb[1].mxu1 }
 0x209   :  { %v293_v32 = vpop.f32.mrb[2].mxu1 }
 0x20a   :  { %310 = vst [vmem:[#allocation9] sm:$0xff] %v309_v30  ;;  %v403_v33 = vpop.f32.mrb[3].mxu1 }
 0x20b   :  { %505 = shalt.err (!%p502_p0)
}
 0x20c   :  { %s506_s5 = scalar_lea.hbm %s634_s6, 128 }
 0x20d   :  { %p507_p1 = scmp.ne.s32.totalorder %s634_s6, %s506_s5  ;;  %p510_p2 = scmp.lt.u32.totalorder %s506_s5, %s634_s6 }
 0x20f   :  { %p512_p3 = pnand %p510_p2, %p507_p1 }
 0x211   :  { %515 = shalt.err (!%p512_p3)
}
 0x212   :  { %320 = dma.vmem_to_hbm [thread:$0]  %s318_s15, 128, %s634_s6, [#allocation5]  }
 0x213   :  { %520 = dma.done.wait [#allocation5], 128  }
 0x214   :  { %521 = vsyncadd [#allocation5], 4294967168 }
 0x215   :  { %324 = vsyncpa [#allocation4], 1 }
 0x216   :  { %325 = vsyncpa [#allocation7], 1 }
 0x217   :  { %326 = vsyncpa [#allocation5], 1 }

// kernel: tpu_custom_call.1
= control target key start
LH: loop header
LB: loop body
LE: loop exit
PB: predicated region body
PF: predicated region fallthrough
CT: control target
= control target key end

     0   :  { %11 = vsyncpa [#allocation4], 0  ;;  %s628_s0 = inlined_call_operand.hbm [shape: bf16[8,128], index: 0, kind: input, shape index: {}]   ;;  %s629_s1 = inlined_call_operand.hbm [shape: bf16[128,128], index: 1, kind: input, shape index: {}]   ;;  %s630_s2 = inlined_call_operand.vmem [shape: f32[1,128], index: 2, kind: input, shape index: {}]   ;;  %s631_s3 = inlined_call_operand.vmem [shape: f32[1,128], index: 3, kind: input, shape index: {}]   ;;  %s632_s4 = inlined_call_operand.hbm [shape: bf16[128,128], index: 4, kind: input, shape index: {}]   ;;  %s633_s5 = inlined_call_operand.vmem [shape: f32[1,128], index: 5, kind: input, shape index: {}]   ;;  %s634_s6 = inlined_call_operand.hbm [shape: f32[8,128], index: 6, kind: output, shape index: {}]  }
   0x1   :  { %12 = vsyncpa [#allocation7], 0 }
   0x2   :  { %13 = vsyncpa [#allocation5], 0  ;;  %s522_s21 = smov [#allocation6]   ;;  %s428_s25 = scalar_lea.hbm %s629_s1, 1024 }
   0x3   :  { %s29_s22 = sshll.u32 %s522_s21, 4  ;;  %p429_p0 = scmp.ne.s32.totalorder %s629_s1, %s428_s25  ;;  %s30_s22 = int_to_ptr.vmem [resolvable:$true] %s29_s22 }
   0x4   :  { %p432_p1 = scmp.lt.u32.totalorder %s428_s25, %s629_s1 }
   0x6   :  { %p434_p2 = pnand %p432_p1, %p429_p0 }
   0x8   :  { %437 = shalt.err (!%p434_p2)
}
   0x9   :  { %s438_s30 = scalar_lea.vmem %s30_s22, 1024  ;;  %p443_p4 = scmp.lt.s32.totalorder %s30_s22, %s30_s22 }
   0xa   :  { %p439_p3 = scmp.ne.s32.totalorder %s30_s22, %s438_s30  ;;  %p444_p5 = scmp.lt.s32.totalorder %s438_s30, %s438_s30 }
   0xc   :  { %p445_p6 = por %p444_p5, %p443_p4 }
   0xe   :  { %p446_p7 = pnand %p445_p6, %p439_p3 }
  0x10   :  { %449 = shalt.err (!%p446_p7)
}
  0x11   :  { %s523_s7 = smov 64   ;;  %s524_s8 = smov 4  }
  0x12   :  { %35 = dma.hbm_to_vmem [thread:$0]  %s629_s1, 1024, %s30_s22, [#allocation7], %s523_s7, %s523_s7, %s524_s8  }
  0x13   :  { %s525_s11 = smov [#allocation3]   ;;  %s526_s13 = smov [#allocation8]  }
  0x14   :  { %s20_s12 = sshll.u32 %s525_s11, 4  ;;  %s45_s14 = sshll.u32 %s526_s13, 4  ;;  %s21_s12 = int_to_ptr.vmem [resolvable:$true] %s20_s12  ;;  %s46_s14 = int_to_ptr.vmem [resolvable:$true] %s45_s14 }
  0x15   :  { %s450_s17 = scalar_lea.hbm %s628_s0, 64 }
  0x16   :  { %p451_p8 = scmp.ne.s32.totalorder %s628_s0, %s450_s17  ;;  %p454_p9 = scmp.lt.u32.totalorder %s450_s17, %s628_s0 }
  0x18   :  { %p456_p10 = pnand %p454_p9, %p451_p8 }
  0x1a   :  { %459 = shalt.err (!%p456_p10)
}
  0x1b   :  { %s460_s1 = scalar_lea.vmem %s21_s12, 64  ;;  %p465_p12 = scmp.lt.s32.totalorder %s21_s12, %s21_s12 }
  0x1c   :  { %p461_p11 = scmp.ne.s32.totalorder %s21_s12, %s460_s1  ;;  %p466_p13 = scmp.lt.s32.totalorder %s460_s1, %s460_s1 }
  0x1e   :  { %p467_p0 = por %p466_p13, %p465_p12 }
  0x20   :  { %p468_p1 = pnand %p467_p0, %p461_p11 }
  0x22   :  { %471 = shalt.err (!%p468_p1)
}
  0x23   :  { %23 = dma.hbm_to_vmem [thread:$0]  %s628_s0, 64, %s21_s12, [#allocation4]  }
  0x24   :  { %s472_s26 = scalar_lea.hbm %s632_s4, 1024 }
  0x25   :  { %p473_p2 = scmp.ne.s32.totalorder %s632_s4, %s472_s26  ;;  %p476_p3 = scmp.lt.u32.totalorder %s472_s26, %s632_s4 }
  0x27   :  { %p478_p4 = pnand %p476_p3, %p473_p2 }
  0x29   :  { %481 = shalt.err (!%p478_p4)
}
  0x2a   :  { %s482_s9 = scalar_lea.vmem %s46_s14, 1024  ;;  %p487_p6 = scmp.lt.s32.totalorder %s46_s14, %s46_s14 }
  0x2b   :  { %p483_p5 = scmp.ne.s32.totalorder %s46_s14, %s482_s9  ;;  %p488_p7 = scmp.lt.s32.totalorder %s482_s9, %s482_s9 }
  0x2d   :  { %p489_p8 = por %p488_p7, %p487_p6 }
  0x2f   :  { %p490_p9 = pnand %p489_p8, %p483_p5 }
  0x31   :  { %493 = shalt.err (!%p490_p9)
}
  0x32   :  { %51 = dma.hbm_to_vmem [thread:$0]  %s632_s4, 1024, %s46_s14, [#allocation7], %s523_s7, %s523_s7, %s524_s8  }
  0x33   :  { %516 = dma.done.wait [#allocation4], 64  }
  0x34   :  { %517 = vsyncadd [#allocation4], 4294967232 }
  0x35   :  { %518 = dma.done.wait [#allocation7], 2048  }
  0x36   :  { %519 = vsyncadd [#allocation7], 4294965248  ;;  %v527_v0 = vmov 0.0   ;;  %vm528_vm0 = vmmov 0   ;;  %v412_v1 = vld [vmem:[#allocation6] sm:$0xff]   ;;  %v413_v2 = vld [vmem:[#allocation6 + $0x8] sm:$0xff]  }
  0x37   :  { %364 = vmatprep.subr.bf16.mxu0 %v527_v0  ;;  %380 = vmatprep.mubr.msk.bf16.mxu0 %vm528_vm0, %v527_v0  ;;  %v414_v3 = vld [vmem:[#allocation6 + $0x10] sm:$0xff]   ;;  %v420_v4 = vld [vmem:[#allocation8] sm:$0xff]   ;;  %v415_v5 = vld [vmem:[#allocation6 + $0x18] sm:$0xff]   ;;  %s529_s14 = smov [#allocation9]  }
  0x38   :  { %384 = vmatprep.subr.bf16.mxu1 %v527_v0  ;;  %400 = vmatprep.mubr.msk.bf16.mxu1 %vm528_vm0, %v527_v0  ;;  %v421_v6 = vld [vmem:[#allocation8 + $0x8] sm:$0xff]   ;;  %v416_v7 = vld [vmem:[#allocation6 + $0x20] sm:$0xff]   ;;  %v422_v8 = vld [vmem:[#allocation8 + $0x10] sm:$0xff]   ;;  %s317_s15 = sshll.u32 %s529_s14, 4  ;;  %s318_s15 = int_to_ptr.vmem [resolvable:$true] %s317_s15 }
  0x39   :  { %365 = vmatpush3.bf16.msra.mxu0 %v412_v1  ;;  %385 = vmatpush3.bf16.msra.mxu1 %v420_v4  ;;  %v417_v9 = vld [vmem:[#allocation6 + $0x28] sm:$0xff]   ;;  %v423_v10 = vld [vmem:[#allocation8 + $0x18] sm:$0xff]   ;;  %v418_v11 = vld [vmem:[#allocation6 + $0x30] sm:$0xff]   ;;  %p499_p11 = scmp.lt.s32.totalorder %s318_s15, %s318_s15 }
  0x3a   :  { %366 = vmatprep.subr.bf16.mxu0 %v527_v0  ;;  %386 = vmatprep.subr.bf16.mxu1 %v527_v0  ;;  %v424_v12 = vld [vmem:[#allocation8 + $0x20] sm:$0xff]   ;;  %v419_v13 = vld [vmem:[#allocation6 + $0x38] sm:$0xff]   ;;  %v425_v14 = vld [vmem:[#allocation8 + $0x28] sm:$0xff]  }
  0x3b   :  { %v69_v15 = vld [vmem:[#allocation3] sm:$0xf]  ;;  %v426_v16 = vld [vmem:[#allocation8 + $0x30] sm:$0xff]  }
  0x3c   :  { %v427_v17 = vld [vmem:[#allocation8 + $0x38] sm:$0xff]  }
  0x3d   :  { %367 = vmatpush3.bf16.msra.mxu0 %v413_v2  ;;  %387 = vmatpush3.bf16.msra.mxu1 %v421_v6  ;;  %v327_v18 = vld [vmem:[%s630_s2] ss:$0 sm:$0xff]  ;;  %s494_s2 = scalar_lea.vmem %s318_s15, 128 }
  0x3e   :  { %368 = vmatprep.subr.bf16.mxu0 %v527_v0  ;;  %388 = vmatprep.subr.bf16.mxu1 %v527_v0  ;;  %v336_v19 = vld [vmem:[%s631_s3] ss:$0 sm:$0xff]  ;;  %p495_p10 = scmp.ne.s32.totalorder %s318_s15, %s494_s2  ;;  %p500_p12 = scmp.lt.s32.totalorder %s494_s2, %s494_s2 }
  0x3f   :  { %v345_v28 = vld [vmem:[%s633_s5] ss:$0 sm:$0xff] }
  0x40   :  { %p501_p13 = por %p500_p12, %p499_p11 }
  0x41   :  { %369 = vmatpush3.bf16.msra.mxu0 %v414_v3  ;;  %389 = vmatpush3.bf16.msra.mxu1 %v422_v8 }
  0x42   :  { %370 = vmatprep.subr.bf16.mxu0 %v527_v0  ;;  %390 = vmatprep.subr.bf16.mxu1 %v527_v0  ;;  %p502_p0 = pnand %p501_p13, %p495_p10 }
  0x45   :  { %371 = vmatpush3.bf16.msra.mxu0 %v415_v5  ;;  %391 = vmatpush3.bf16.msra.mxu1 %v423_v10 }
  0x46   :  { %372 = vmatprep.subr.bf16.mxu0 %v527_v0  ;;  %392 = vmatprep.subr.bf16.mxu1 %v527_v0 }
  0x49   :  { %373 = vmatpush3.bf16.msra.mxu0 %v416_v7  ;;  %393 = vmatpush3.bf16.msra.mxu1 %v424_v12 }
  0x4a   :  { %374 = vmatprep.subr.bf16.mxu0 %v527_v0  ;;  %394 = vmatprep.subr.bf16.mxu1 %v527_v0 }
  0x4d   :  { %375 = vmatpush3.bf16.msra.mxu0 %v417_v9  ;;  %395 = vmatpush3.bf16.msra.mxu1 %v425_v14 }
  0x4e   :  { %376 = vmatprep.subr.bf16.mxu0 %v527_v0  ;;  %396 = vmatprep.subr.bf16.mxu1 %v527_v0 }
  0x51   :  { %377 = vmatpush3.bf16.msra.mxu0 %v418_v11  ;;  %397 = vmatpush3.bf16.msra.mxu1 %v426_v16 }
  0x52   :  { %378 = vmatprep.subr.bf16.mxu0 %v527_v0  ;;  %398 = vmatprep.subr.bf16.mxu1 %v527_v0 }
  0x55   :  { %379 = vmatpush3.bf16.msra.mxu0 %v419_v13  ;;  %399 = vmatpush3.bf16.msra.mxu1 %v427_v17 }
  0x58   :  { %381 = vmatmul.mubr.bf16.vlgmr.msra.gmra.mrb[0].mxu0 %v69_v15 }
 0x12b   :  { %v176_v20 = vpop.f32.mrb[0].mxu0 }
 0x12c   :  { %v177_v21 = vadd.f32 %v327_v18, %v176_v20  ;;  %v382_v22 = vpop.f32.mrb[1].mxu0 }
 0x12d   :  { %v179_v23 = vpop.f32.mrb[2].mxu0 }
 0x12e   :  { %v188_v24 = vmul.f32 %v336_v19, %v177_v21  ;;  %v383_v25 = vpop.f32.mrb[3].mxu0 }
 0x130   :  { %v189_v26 = vmax.f32 %v188_v24, 0.0 }
 0x132   :  { %v191_v27 = vpack.c.bf16 %v189_v26, %v189_v26 }
 0x134   :  { %401 = vmatmul.mubr.bf16.vlgmr.msra.gmra.mrb[0].mxu1 %v191_v27 }
 0x207   :  { %v290_v29 = vpop.f32.mrb[0].mxu1 }
 0x208   :  { %v309_v30 = vadd.f32 %v345_v28, %v290_v29  ;;  %v402_v31 = vpop.f32.mrb[1].mxu1 }
 0x209   :  { %v293_v32 = vpop.f32.mrb[2].mxu1 }
 0x20a   :  { %310 = vst [vmem:[#allocation9] sm:$0xff] %v309_v30  ;;  %v403_v33 = vpop.f32.mrb[3].mxu1 }
 0x20b   :  { %505 = shalt.err (!%p502_p0)
}
 0x20c   :  { %s506_s5 = scalar_lea.hbm %s634_s6, 128 }
 0x20d   :  { %p507_p1 = scmp.ne.s32.totalorder %s634_s6, %s506_s5  ;;  %p510_p2 = scmp.lt.u32.totalorder %s506_s5, %s634_s6 }
 0x20f   :  { %p512_p3 = pnand %p510_p2, %p507_p1 }
 0x211   :  { %515 = shalt.err (!%p512_p3)
}
 0x212   :  { %320 = dma.vmem_to_hbm [thread:$0]  %s318_s15, 128, %s634_s6, [#allocation5]  }
 0x213   :  { %520 = dma.done.wait [#allocation5], 128  }
 0x214   :  { %521 = vsyncadd [#allocation5], 4294967168 }
 0x215   :  { %324 = vsyncpa [#allocation4], 1 }
 0x216   :  { %325 = vsyncpa [#allocation7], 1 }
 0x217   :  { %326 = vsyncpa [#allocation5], 1 }

</bundles_post_ra>
